<compile_context>
chip_gen: v7x
topology: tpu7x:2x2x1
jax: 0.10.0
libtpu: 0.0.40
codegen_flags: <defaults>
</compile_context>

<pallas_src>
import math

import jax
import jax.numpy as jnp
from jax.experimental import pallas as pl
from jax.experimental.pallas import tpu as pltpu


def _drop_path_kernel(scale_ref, x_ref, o_ref):
    # scale_ref: (bb, 1) per-row scale; x_ref / o_ref: (bb, tn) data tile.
    o_ref[...] = x_ref[...] * scale_ref[...]


def drop_path(x: jax.Array, key: jax.Array, drop_prob: float = 0.0,
              scale_by_keep: bool = True) -> jax.Array:
    """Pallas equivalent of DropPath.forward (training mode)."""
    if drop_prob < 0.0 or drop_prob > 1.0:
        raise ValueError("drop_path_prob should be between 0 and 1.")
    if drop_prob == 0.0:
        return x

    keep_prob = 1.0 - drop_prob
    B = x.shape[0]
    N = int(math.prod(x.shape[1:])) if x.ndim > 1 else 1

    # Per-sample keep mask / scale, computed with standard JAX RNG.
    keep = jax.random.bernoulli(key, p=keep_prob, shape=(B,))
    if scale_by_keep and keep_prob > 0.0:
        scale = keep.astype(x.dtype) / jnp.asarray(keep_prob, dtype=x.dtype)
    else:
        scale = keep.astype(x.dtype)

    itemsize = jnp.dtype(x.dtype).itemsize
    sub = {4: 8, 2: 16, 1: 32}.get(itemsize, 8)   # dtype-native sublane multiple
    LANE = 128
    BLOCK_BYTES = 4 << 20                          # ~4 MiB input block target

    x2 = x.reshape(B, N)

    # ---- small-batch row split (free contiguous reshape) ------------------
    # If B is below the native sublane multiple and N is lane-aligned, split
    # each sample's row into R sub-rows so blocks have full sublane occupancy.
    R = 1
    if B < sub and N % LANE == 0 and N > 0:
        M = N // LANE
        for cand in range(1, min(M, 256) + 1):     # need R <= sub, so tiny search
            if M % cand == 0 and B * cand >= sub:
                R = cand
                break
    if R > 1:
        x2 = x2.reshape(B * R, N // R)
        scale = jnp.repeat(scale, R)
    Bt, Nn = x2.shape
    scale2d = scale.reshape(Bt, 1)

    # ---- tile selection ----------------------------------------------------
    # Lane dim: full row if it fits the block budget (legal even when not a
    # multiple of 128, since it equals the full array dim); otherwise the
    # largest 128-multiple that fits (ragged edge handled by the cdiv grid).
    if Nn <= LANE:
        tn = Nn
    elif sub * Nn * itemsize <= BLOCK_BYTES:
        tn = Nn
    else:
        tn = max(LANE, (BLOCK_BYTES // (sub * itemsize)) // LANE * LANE)
        tn = min(tn, Nn // LANE * LANE)

    # Sublane dim: whole batch if it fits, otherwise a sub-multiple of rows.
    max_rows = max(sub, (BLOCK_BYTES // max(1, tn * itemsize)) // sub * sub)
    bb = Bt if Bt <= max_rows else max_rows

    grid_b = pl.cdiv(Bt, bb)
    grid_n = pl.cdiv(Nn, tn)

    # v7x megacore: avoid a 1-step grid on non-trivially-sized arrays so both
    # TensorCores get work (harmless elsewhere).
    if grid_b * grid_n == 1 and Bt * Nn * itemsize > (1 << 20) and Bt >= 2 * sub:
        bb = max(sub, (Bt // 2) // sub * sub)
        grid_b = pl.cdiv(Bt, bb)

    out = pl.pallas_call(
        _drop_path_kernel,
        out_shape=jax.ShapeDtypeStruct((Bt, Nn), x.dtype),
        grid=(grid_b, grid_n),
        in_specs=[
            pl.BlockSpec((bb, 1), lambda i, j: (i, 0)),
            pl.BlockSpec((bb, tn), lambda i, j: (i, j)),
        ],
        out_specs=pl.BlockSpec((bb, tn), lambda i, j: (i, j)),
        compiler_params=pltpu.CompilerParams(
            dimension_semantics=("parallel", "parallel"),
            vmem_limit_bytes=48 << 20,
        ),
    )(scale2d, x2)

    return out.reshape(x.shape)


if __name__ == "__main__":
    key = jax.random.PRNGKey(0)
    k_data, k_drop = jax.random.split(key)
    x = jax.random.normal(k_data, (2, 4, 16, 16), dtype=jnp.float32)

    drop_prob = 0.3
    keep_prob = 1.0 - drop_prob

    y = drop_path(x, k_drop, drop_prob=drop_prob, scale_by_keep=True)
    y = jax.block_until_ready(y)

    ok = True
    # Each sample is either all-zero or x / keep_prob.
    for b in range(x.shape[0]):
        xb, yb = x[b], y[b]
        is_zero = bool(jnp.max(jnp.abs(yb)) < 1e-6)
        is_scaled = bool(jnp.max(jnp.abs(yb - xb / keep_prob)) < 1e-4)
        ok = ok and (is_zero or is_scaled)

    # scale_by_keep=False: samples are either zero or exactly x.
    y_ns = jax.block_until_ready(
        drop_path(x, k_drop, drop_prob=drop_prob, scale_by_keep=False))
    for b in range(x.shape[0]):
        is_zero = bool(jnp.max(jnp.abs(y_ns[b])) < 1e-6)
        is_same = bool(jnp.max(jnp.abs(y_ns[b] - x[b])) < 1e-6)
        ok = ok and (is_zero or is_same)

    # drop_prob == 0.0 must be identity.
    y0 = drop_path(x, k_drop, drop_prob=0.0)
    ok = ok and bool(jnp.array_equal(y0, x))

    # Ragged-shape exercise (B and N not aligned to 8 / 128).
    x_odd = jax.random.normal(k_data, (3, 5, 7, 9), dtype=jnp.float32)
    y_odd = jax.block_until_ready(
        drop_path(x_odd, k_drop, drop_prob=drop_prob, scale_by_keep=True))
    for b in range(x_odd.shape[0]):
        is_zero = bool(jnp.max(jnp.abs(y_odd[b])) < 1e-6)
        is_scaled = bool(jnp.max(jnp.abs(y_odd[b] - x_odd[b] / keep_prob)) < 1e-4)
        ok = ok and (is_zero or is_scaled)

    if ok:
        print("KERNEL_OK")
    else:
        raise SystemExit("drop_path output did not match expected semantics")
</pallas_src>

<mosaic_0001>
module attributes {stable_mosaic.version = 11 : i64} {
  func.func @_drop_path_kernel(%arg0: i32, %arg1: i32, %arg2: memref<8x1xf32, #tpu.memory_space<vmem>>, %arg3: memref<8x256xf32, #tpu.memory_space<vmem>>, %arg4: memref<8x256xf32, #tpu.memory_space<vmem>>) attributes {dimension_semantics = [#tpu.dimension_semantics<parallel>, #tpu.dimension_semantics<parallel>], iteration_bounds = array<i64: 1, 1>, scalar_prefetch = 0 : i64, scratch_operands = 0 : i64, tpu.core_type = #tpu.core_type<tc>, window_params = [{transform_indices = @transform_0, window_bounds = array<i64: 8, 1>}, {transform_indices = @transform_1, window_bounds = array<i64: 8, 256>}, {transform_indices = @transform_2, window_bounds = array<i64: 8, 256>}]} {
    %c0 = arith.constant 0 : index
    %c0_0 = arith.constant 0 : index
    %0 = vector.load %arg3[%c0, %c0_0] : memref<8x256xf32, #tpu.memory_space<vmem>>, vector<8x256xf32>
    %c0_1 = arith.constant 0 : index
    %c0_2 = arith.constant 0 : index
    %1 = vector.load %arg2[%c0_1, %c0_2] : memref<8x1xf32, #tpu.memory_space<vmem>>, vector<8x1xf32>
    %2 = vector.broadcast %1 : vector<8x1xf32> to vector<8x256xf32>
    %3 = arith.mulf %0, %2 : vector<8x256xf32>
    %c0_3 = arith.constant 0 : index
    %c0_4 = arith.constant 0 : index
    %4 = vector.load %arg4[%c0_3, %c0_4] : memref<8x256xf32, #tpu.memory_space<vmem>>, vector<8x256xf32>
    tpu.vector_store %arg4[%c0_3, %c0_4], %3 {strides = array<i32>} : memref<8x256xf32, #tpu.memory_space<vmem>>, vector<8x256xf32>,
    return
  }
  func.func @transform_0(%arg0: i32, %arg1: i32) -> (i32, i32) {
    %c0_i32 = arith.constant 0 : i32
    %c0_i32_0 = arith.constant 0 : i32
    return %arg0, %c0_i32 : i32, i32
  }
  func.func @transform_1(%arg0: i32, %arg1: i32) -> (i32, i32) {
    %c0_i32 = arith.constant 0 : i32
    return %arg0, %arg1 : i32, i32
  }
  func.func @transform_2(%arg0: i32, %arg1: i32) -> (i32, i32) {
    %c0_i32 = arith.constant 0 : i32
    return %arg0, %arg1 : i32, i32
  }
}

</mosaic_0001>

<bundles_post_ra>
// kernel: tpu_custom_call.1
= control target key start
LH: loop header
LB: loop body
LE: loop exit
PB: predicated region body
PF: predicated region fallthrough
CT: control target
= control target key end

     0   :  { %7 = vsyncpa [#allocation3], 0  ;;  %s148_s0 = inlined_call_operand.vmem [shape: f32[8,1], index: 0, kind: input, shape index: {}]   ;;  %s149_s1 = inlined_call_operand.hbm [shape: f32[8,256], index: 1, kind: input, shape index: {}]   ;;  %s150_s2 = inlined_call_operand.hbm [shape: f32[8,256], index: 2, kind: output, shape index: {}]  }
   0x1   :  { %8 = vsyncpa [#allocation4], 0  ;;  %s103_s9 = smov [#allocation2]   ;;  %s55_s13 = scalar_lea.hbm %s149_s1, 256 }
   0x2   :  { %s17_s10 = sshll.u32 %s103_s9, 4  ;;  %p56_p0 = scmp.ne.s32.totalorder %s149_s1, %s55_s13  ;;  %s18_s10 = int_to_ptr.vmem [resolvable:$true] %s17_s10 }
   0x3   :  { %p59_p1 = scmp.lt.u32.totalorder %s55_s13, %s149_s1 }
   0x5   :  { %p61_p2 = pnand %p59_p1, %p56_p0 }
   0x7   :  { %64 = shalt.err (!%p61_p2)
}
   0x8   :  { %s65_s18 = scalar_lea.vmem %s18_s10, 256  ;;  %p70_p4 = scmp.lt.s32.totalorder %s18_s10, %s18_s10 }
   0x9   :  { %p66_p3 = scmp.ne.s32.totalorder %s18_s10, %s65_s18  ;;  %p71_p5 = scmp.lt.s32.totalorder %s65_s18, %s65_s18 }
   0xb   :  { %p72_p6 = por %p71_p5, %p70_p4 }
   0xd   :  { %p73_p7 = pnand %p72_p6, %p66_p3 }
   0xf   :  { %76 = shalt.err (!%p73_p7)
}
  0x10   :  { %20 = dma.hbm_to_vmem [thread:$0]  %s149_s1, 256, %s18_s10, [#allocation3]  }
  0x11   :  { %99 = dma.done.wait [#allocation3], 256  }
  0x12   :  { %100 = vsyncadd [#allocation3], 4294967040  ;;  %v104_v0 = vmov 0   ;;  %v26_v1 = vld [vmem:[%s148_s0] sm:$0xff]  ;;  %v25_v3 = vld [vmem:[#allocation2 + $0x8] sm:$0xff]  ;;  %s105_s23 = smov [#allocation5]  }
  0x13   :  { %54 = vset.pattern.permute.xlu0 %v104_v0  ;;  %v24_v2 = vld [vmem:[#allocation2] sm:$0xff]  ;;  %s42_s24 = sshll.u32 %s105_s23, 4  ;;  %s43_s24 = int_to_ptr.vmem [resolvable:$true] %s42_s24 }
  0x14   :  { %29 = vperm.xlu0 %54, %v26_v1   ;;  %s77_s1 = scalar_lea.vmem %s43_s24, 256  ;;  %p82_p9 = scmp.lt.s32.totalorder %s43_s24, %s43_s24 }
  0x15   :  { %p78_p8 = scmp.ne.s32.totalorder %s43_s24, %s77_s1  ;;  %p83_p10 = scmp.lt.s32.totalorder %s77_s1, %s77_s1 }
  0x17   :  { %p84_p11 = por %p83_p10, %p82_p9 }
  0x19   :  { %p85_p12 = pnand %p84_p11, %p78_p8 }
  0x93   :  { %v30_v4 = vpop.permute.xlu0 %29 }
  0x94   :  { %v32_v5 = vmul.f32 %v30_v4, %v24_v2  ;;  %v33_v6 = vmul.f32 %v30_v4, %v25_v3 }
  0x96   :  { %34 = vst [vmem:[#allocation5] sm:$0xff] %v32_v5  ;;  %35 = vst [vmem:[#allocation5 + $0x8] sm:$0xff] %v33_v6 }
  0x97   :  { %88 = shalt.err (!%p85_p12)
}
  0x98   :  { %s89_s26 = scalar_lea.hbm %s150_s2, 256 }
  0x99   :  { %p90_p13 = scmp.ne.s32.totalorder %s150_s2, %s89_s26  ;;  %p93_p0 = scmp.lt.u32.totalorder %s89_s26, %s150_s2 }
  0x9b   :  { %p95_p1 = pnand %p93_p0, %p90_p13 }
  0x9d   :  { %98 = shalt.err (!%p95_p1)
}
  0x9e   :  { %45 = dma.vmem_to_hbm [thread:$0]  %s43_s24, 256, %s150_s2, [#allocation4]  }
  0x9f   :  { %101 = dma.done.wait [#allocation4], 256  }
  0xa0   :  { %102 = vsyncadd [#allocation4], 4294967040 }
  0xa1   :  { %49 = vsyncpa [#allocation3], 1 }
  0xa2   :  { %50 = vsyncpa [#allocation4], 1 }

</bundles_post_ra>
